<compile_context>
chip_gen: v5e
topology: v5e:2x2
jax: 0.10.0
libtpu: 0.0.40
codegen_flags: <defaults>
</compile_context>

<pallas_src>
import jax
import jax.numpy as jnp
from jax import lax
from jax.experimental import pallas as pl
from jax.experimental.pallas import tpu as pltpu

EPS = 1e-5


def _actor_kernel(x_ref,
                  w1_ref, bn1_ref,
                  w2_ref, bn2_ref,
                  w3_ref, b3_ref,
                  o_ref):
    x = x_ref[...]

    # ---- layer 1: Linear(statesize, 256) (bias cancelled by BN) + BN + relu ----
    h = jnp.dot(x, w1_ref[...], preferred_element_type=jnp.float32)
    mu = jnp.mean(h, axis=0, keepdims=True)
    hc = h - mu                                            # centered once, reused
    var = jnp.mean(hc * hc, axis=0, keepdims=True)         # biased var (training BN)
    scale = bn1_ref[0:1, :] * lax.rsqrt(var + EPS)         # gamma folded into scale
    h1 = jnp.maximum(hc * scale + bn1_ref[1:2, :], 0.0)

    # ---- layer 2: Linear(256, 128) (bias cancelled by BN) + BN + relu ----
    h = jnp.dot(h1, w2_ref[...], preferred_element_type=jnp.float32)
    mu = jnp.mean(h, axis=0, keepdims=True)
    hc = h - mu
    var = jnp.mean(hc * hc, axis=0, keepdims=True)
    scale = bn2_ref[0:1, :] * lax.rsqrt(var + EPS)
    h2 = jnp.maximum(hc * scale + bn2_ref[1:2, :], 0.0)

    # ---- layer 3: Linear(128, 1) then 2 * tanh, computed in transposed
    #      orientation: contract last dims of w3 (1,128) and h2 (B,128) so the
    #      output is a lane-dense (1, B) row and no transpose is materialized.
    y = lax.dot_general(w3_ref[...], h2,
                        dimension_numbers=(((1,), (1,)), ((), ())),
                        preferred_element_type=jnp.float32) + b3_ref[0]
    o_ref[...] = 2.0 * jnp.tanh(y)


def actor_ddpg_forward(x, params):
    """x: (B, statesize) f32. Returns (B, 1) f32, matching the PyTorch module."""
    B, S = x.shape

    # Rough f32 footprint of the live tiles in the fused (un-tiled) path; stay
    # under the scoped-VMEM limit we request below (with headroom for the
    # weights and compiler temporaries).
    approx_vmem = 4 * B * (max(S, 128) + 3 * 256 + 3 * 128)
    if approx_vmem > 20 * 1024 * 1024:
        raise NotImplementedError(
            "Batch too large for the single-pass fused BN kernel; "
            "TODO(synk): two-pass batch-tiled BN with a grid over B.")

    args = (x,
            params["w1"], params["bn1"],
            params["w2"], params["bn2"],
            params["w3"], params["b3"])

    vmem = pl.BlockSpec(memory_space=pltpu.MemorySpace.VMEM)
    smem = pl.BlockSpec(memory_space=pltpu.MemorySpace.SMEM)

    flops = 2 * B * (S * 256 + 256 * 128 + 128) + 12 * B * (256 + 128)
    bytes_accessed = 4 * (B * S + S * 256 + 256 * 128 + 128
                          + 2 * (256 + 128) + 1 + B)

    out = pl.pallas_call(
        _actor_kernel,
        out_shape=jax.ShapeDtypeStruct((1, B), jnp.float32),   # lane-dense output
        in_specs=[vmem, vmem, vmem, vmem, vmem, vmem, smem],
        out_specs=vmem,
        compiler_params=pltpu.CompilerParams(
            vmem_limit_bytes=32 * 1024 * 1024),
        cost_estimate=pl.CostEstimate(
            flops=flops,
            transcendentals=B + 256 + 128,
            bytes_accessed=bytes_accessed),
    )(*args)
    return out.T   # (B, 1), same shape as the PyTorch forward


def init_params(key, statesize):
    """Deterministic init matching the PyTorch module:
    kaiming_uniform_ (a=0, fan_in) on weights, zeros on Linear biases,
    BN gamma=1, beta=0.  Linear weights stored as (in, out); w3 as a (1, 128)
    row; per-layer BN affine params packed as (2, N) = [gamma; beta]."""
    k1, k2, k3 = jax.random.split(key, 3)

    def kaiming_uniform(k, fan_in, fan_out):
        bound = jnp.sqrt(6.0 / fan_in)   # gain sqrt(2), bound = sqrt(3)*gain/sqrt(fan_in)
        return jax.random.uniform(k, (fan_in, fan_out), jnp.float32, -bound, bound)

    return {
        "w1": kaiming_uniform(k1, statesize, 256),
        "w2": kaiming_uniform(k2, 256, 128),
        "w3": kaiming_uniform(k3, 128, 1).T,          # (1, 128) row
        "b3": jnp.zeros((1,), jnp.float32),           # scalar bias, lives in SMEM
        # b1 / b2 are zero at init and are mathematically cancelled by BN,
        # so they are not materialized / not passed to the kernel.
        "bn1": jnp.concatenate([jnp.ones((1, 256), jnp.float32),
                                jnp.zeros((1, 256), jnp.float32)], axis=0),
        "bn2": jnp.concatenate([jnp.ones((1, 128), jnp.float32),
                                jnp.zeros((1, 128), jnp.float32)], axis=0),
    }


def _reference(x, p):
    def bn(h, g, beta):
        mu = jnp.mean(h, axis=0, keepdims=True)
        var = jnp.mean((h - mu) ** 2, axis=0, keepdims=True)
        return (h - mu) / jnp.sqrt(var + EPS) * g + beta

    h = jnp.maximum(bn(x @ p["w1"], p["bn1"][0:1], p["bn1"][1:2]), 0.0)
    h = jnp.maximum(bn(h @ p["w2"], p["bn2"][0:1], p["bn2"][1:2]), 0.0)
    return 2.0 * jnp.tanh(h @ p["w3"].T + p["b3"])


if __name__ == "__main__":
    key = jax.random.PRNGKey(0)
    kx, kp = jax.random.split(key)

    statesize = 32
    batch = 8
    x = jax.random.normal(kx, (batch, statesize), jnp.float32)
    params = init_params(kp, statesize)

    y = jax.block_until_ready(actor_ddpg_forward(x, params))
    y_ref = _reference(x, params)

    assert y.shape == (batch, 1)
    assert jnp.allclose(y, y_ref, rtol=1e-5, atol=1e-5)
    print("KERNEL_OK")
</pallas_src>

<mosaic_0001>
module attributes {stable_mosaic.version = 11 : i64} {
  func.func @_actor_kernel(%arg0: memref<8x32xf32, #tpu.memory_space<vmem>>, %arg1: memref<32x256xf32, #tpu.memory_space<vmem>>, %arg2: memref<2x256xf32, #tpu.memory_space<vmem>>, %arg3: memref<256x128xf32, #tpu.memory_space<vmem>>, %arg4: memref<2x128xf32, #tpu.memory_space<vmem>>, %arg5: memref<1x128xf32, #tpu.memory_space<vmem>>, %arg6: memref<1xf32, #tpu.memory_space<smem>>, %arg7: memref<1x8xf32, #tpu.memory_space<vmem>>) attributes {dimension_semantics = [], scalar_prefetch = 0 : i64, scratch_operands = 0 : i64, tpu.core_type = #tpu.core_type<tc>} {
    %c0 = arith.constant 0 : index
    %c0_0 = arith.constant 0 : index
    %0 = vector.load %arg0[%c0, %c0_0] : memref<8x32xf32, #tpu.memory_space<vmem>>, vector<8x32xf32>
    %c0_1 = arith.constant 0 : index
    %c0_2 = arith.constant 0 : index
    %1 = vector.load %arg1[%c0_1, %c0_2] : memref<32x256xf32, #tpu.memory_space<vmem>>, vector<32x256xf32>
    %cst = arith.constant dense<0.000000e+00> : vector<8x256xf32>
    %2 = tpu.matmul %0, %1, %cst {dimension_numbers = #tpu.dot_dimension_numbers<[1], [0], [0], [1], [0, 0, 1, 1], [], []>} : vector<8x32xf32>, vector<32x256xf32>, vector<8x256xf32> -> vector<8x256xf32>
    %cst_3 = arith.constant dense<0.000000e+00> : vector<256xf32>
    %3 = vector.multi_reduction <add>, %2, %cst_3 [0] : vector<8x256xf32> to vector<256xf32>
    %4 = vector.shape_cast %3 : vector<256xf32> to vector<1x256xf32>
    %cst_4 = arith.constant 8.000000e+00 : f32
    %5 = vector.broadcast %cst_4 : f32 to vector<1x256xf32>
    %6 = arith.divf %4, %5 : vector<1x256xf32>
    %7 = vector.broadcast %6 : vector<1x256xf32> to vector<8x256xf32>
    %8 = arith.subf %2, %7 : vector<8x256xf32>
    %9 = arith.mulf %8, %8 : vector<8x256xf32>
    %cst_5 = arith.constant dense<0.000000e+00> : vector<256xf32>
    %10 = vector.multi_reduction <add>, %9, %cst_5 [0] : vector<8x256xf32> to vector<256xf32>
    %11 = vector.shape_cast %10 : vector<256xf32> to vector<1x256xf32>
    %cst_6 = arith.constant 8.000000e+00 : f32
    %12 = vector.broadcast %cst_6 : f32 to vector<1x256xf32>
    %13 = arith.divf %11, %12 : vector<1x256xf32>
    %c0_7 = arith.constant 0 : index
    %c0_8 = arith.constant 0 : index
    %14 = vector.load %arg2[%c0_7, %c0_8] : memref<2x256xf32, #tpu.memory_space<vmem>>, vector<1x256xf32>
    %cst_9 = arith.constant 9.99999974E-6 : f32
    %15 = vector.broadcast %cst_9 : f32 to vector<1x256xf32>
    %16 = arith.addf %13, %15 : vector<1x256xf32>
    %17 = math.rsqrt %16 : vector<1x256xf32>
    %18 = arith.mulf %14, %17 : vector<1x256xf32>
    %19 = vector.broadcast %18 : vector<1x256xf32> to vector<8x256xf32>
    %20 = arith.mulf %8, %19 : vector<8x256xf32>
    %c1 = arith.constant 1 : index
    %c0_10 = arith.constant 0 : index
    %21 = vector.load %arg2[%c1, %c0_10] : memref<2x256xf32, #tpu.memory_space<vmem>>, vector<1x256xf32>
    %22 = vector.broadcast %21 : vector<1x256xf32> to vector<8x256xf32>
    %23 = arith.addf %20, %22 : vector<8x256xf32>
    %cst_11 = arith.constant 0.000000e+00 : f32
    %24 = vector.broadcast %cst_11 : f32 to vector<8x256xf32>
    %25 = arith.maximumf %23, %24 : vector<8x256xf32>
    %c0_12 = arith.constant 0 : index
    %c0_13 = arith.constant 0 : index
    %26 = vector.load %arg3[%c0_12, %c0_13] : memref<256x128xf32, #tpu.memory_space<vmem>>, vector<256x128xf32>
    %cst_14 = arith.constant dense<0.000000e+00> : vector<8x128xf32>
    %27 = tpu.matmul %25, %26, %cst_14 {dimension_numbers = #tpu.dot_dimension_numbers<[1], [0], [0], [1], [0, 0, 1, 1], [], []>} : vector<8x256xf32>, vector<256x128xf32>, vector<8x128xf32> -> vector<8x128xf32>
    %cst_15 = arith.constant dense<0.000000e+00> : vector<128xf32>
    %28 = vector.multi_reduction <add>, %27, %cst_15 [0] : vector<8x128xf32> to vector<128xf32>
    %29 = vector.shape_cast %28 : vector<128xf32> to vector<1x128xf32>
    %cst_16 = arith.constant 8.000000e+00 : f32
    %30 = vector.broadcast %cst_16 : f32 to vector<1x128xf32>
    %31 = arith.divf %29, %30 : vector<1x128xf32>
    %32 = vector.broadcast %31 : vector<1x128xf32> to vector<8x128xf32>
    %33 = arith.subf %27, %32 : vector<8x128xf32>
    %34 = arith.mulf %33, %33 : vector<8x128xf32>
    %cst_17 = arith.constant dense<0.000000e+00> : vector<128xf32>
    %35 = vector.multi_reduction <add>, %34, %cst_17 [0] : vector<8x128xf32> to vector<128xf32>
    %36 = vector.shape_cast %35 : vector<128xf32> to vector<1x128xf32>
    %cst_18 = arith.constant 8.000000e+00 : f32
    %37 = vector.broadcast %cst_18 : f32 to vector<1x128xf32>
    %38 = arith.divf %36, %37 : vector<1x128xf32>
    %c0_19 = arith.constant 0 : index
    %c0_20 = arith.constant 0 : index
    %39 = vector.load %arg4[%c0_19, %c0_20] : memref<2x128xf32, #tpu.memory_space<vmem>>, vector<1x128xf32>
    %cst_21 = arith.constant 9.99999974E-6 : f32
    %40 = vector.broadcast %cst_21 : f32 to vector<1x128xf32>
    %41 = arith.addf %38, %40 : vector<1x128xf32>
    %42 = math.rsqrt %41 : vector<1x128xf32>
    %43 = arith.mulf %39, %42 : vector<1x128xf32>
    %44 = vector.broadcast %43 : vector<1x128xf32> to vector<8x128xf32>
    %45 = arith.mulf %33, %44 : vector<8x128xf32>
    %c1_22 = arith.constant 1 : index
    %c0_23 = arith.constant 0 : index
    %46 = vector.load %arg4[%c1_22, %c0_23] : memref<2x128xf32, #tpu.memory_space<vmem>>, vector<1x128xf32>
    %47 = vector.broadcast %46 : vector<1x128xf32> to vector<8x128xf32>
    %48 = arith.addf %45, %47 : vector<8x128xf32>
    %cst_24 = arith.constant 0.000000e+00 : f32
    %49 = vector.broadcast %cst_24 : f32 to vector<8x128xf32>
    %50 = arith.maximumf %48, %49 : vector<8x128xf32>
    %c0_25 = arith.constant 0 : index
    %c0_26 = arith.constant 0 : index
    %51 = vector.load %arg5[%c0_25, %c0_26] : memref<1x128xf32, #tpu.memory_space<vmem>>, vector<1x128xf32>
    %cst_27 = arith.constant dense<0.000000e+00> : vector<1x8xf32>
    %52 = tpu.matmul %51, %50, %cst_27 {dimension_numbers = #tpu.dot_dimension_numbers<[1], [1], [0], [0], [0, 0, 1, 0], [], []>} : vector<1x128xf32>, vector<8x128xf32>, vector<1x8xf32> -> vector<1x8xf32>
    %c0_28 = arith.constant 0 : index
    %53 = memref.load %arg6[%c0_28] : memref<1xf32, #tpu.memory_space<smem>>
    %54 = vector.broadcast %53 : f32 to vector<1x8xf32>
    %55 = arith.addf %52, %54 : vector<1x8xf32>
    %56 = math.tanh %55 : vector<1x8xf32>
    %cst_29 = arith.constant 2.000000e+00 : f32
    %57 = vector.broadcast %cst_29 : f32 to vector<1x8xf32>
    %58 = arith.mulf %57, %56 : vector<1x8xf32>
    %c0_30 = arith.constant 0 : index
    %c0_31 = arith.constant 0 : index
    %59 = vector.load %arg7[%c0_30, %c0_31] : memref<1x8xf32, #tpu.memory_space<vmem>>, vector<1x8xf32>
    tpu.vector_store %arg7[%c0_30, %c0_31], %58 {strides = array<i32>} : memref<1x8xf32, #tpu.memory_space<vmem>>, vector<1x8xf32>,
    return
  }
}

</mosaic_0001>

<bundles_post_ra>
// kernel: tpu_custom_call.1
= control target key start
LH: loop header
LB: loop body
LE: loop exit
PB: predicated region body
PF: predicated region fallthrough
CT: control target
= control target key end

     0   :  { %13 = vsyncpa [#allocation4], 0  ;;  %s626_s0 = inlined_call_operand.hbm [shape: f32[8,32], index: 0, kind: input, shape index: {}]   ;;  %s627_s1 = inlined_call_operand.hbm [shape: f32[32,256], index: 1, kind: input, shape index: {}]   ;;  %s628_s2 = inlined_call_operand.hbm [shape: f32[2,256], index: 2, kind: input, shape index: {}]   ;;  %s629_s3 = inlined_call_operand.hbm [shape: f32[256,128], index: 3, kind: input, shape index: {}]   ;;  %s630_s4 = inlined_call_operand.vmem [shape: f32[2,128], index: 4, kind: input, shape index: {}]   ;;  %s631_s5 = inlined_call_operand.vmem [shape: f32[1,128], index: 5, kind: input, shape index: {}]   ;;  %s632_s6 = inlined_call_operand.<no memory space> [shape: f32[1], index: 6, kind: input, shape index: {}]   ;;  %s633_s7 = inlined_call_operand.hbm [shape: f32[1,8], index: 7, kind: output, shape index: {}]  }
   0x1   :  { %14 = vsyncpa [#allocation7], 0 }
   0x2   :  { %15 = vsyncpa [#allocation10], 0  ;;  %s32_s26 = sshll.u32 %s627_s1, 4  ;;  %s33_s26 = int_to_ptr.hbm [resolvable:$true] %s32_s26 }
   0x3   :  { %16 = vsyncpa [#allocation5], 0  ;;  %s531_s27 = smov [#allocation6]   ;;  %s22_s8 = sshll.u32 %s626_s0, 4  ;;  %s23_s8 = int_to_ptr.hbm [resolvable:$true] %s22_s8 }
   0x4   :  { %s34_s28 = sshll.u32 %s531_s27, 4  ;;  %s532_s9 = smov 256   ;;  %s35_s28 = int_to_ptr.vmem [resolvable:$true] %s34_s28 }
   0x5   :  { %s533_s10 = smov 16   ;;  %s534_s11 = smov [#allocation3]  }
   0x6   :  { %40 = dma.hbm_to_vmem [thread:$0]  %s33_s26, 1024, %s35_s28, [#allocation7], %s532_s9, %s532_s9, %s533_s10  }
   0x7   :  { %s24_s12 = sshll.u32 %s534_s11, 4  ;;  %s46_s15 = sshll.u32 %s628_s2, 4  ;;  %s25_s12 = int_to_ptr.vmem [resolvable:$true] %s24_s12  ;;  %s47_s15 = int_to_ptr.hbm [resolvable:$true] %s46_s15 }
   0x8   :  { %27 = dma.hbm_to_vmem [thread:$0]  %s23_s8, 128, %s25_s12, [#allocation4]  }
   0x9   :  { %s56_s17 = sshll.u32 %s629_s3, 4  ;;  %s535_s18 = smov [#allocation8]   ;;  %s57_s17 = int_to_ptr.hbm [resolvable:$true] %s56_s17 }
   0xa   :  { %s48_s19 = sshll.u32 %s535_s18, 4  ;;  %s536_s0 = smov [#allocation9]   ;;  %s49_s19 = int_to_ptr.vmem [resolvable:$true] %s48_s19 }
   0xb   :  { %51 = dma.hbm_to_vmem [thread:$0]  %s47_s15, 64, %s49_s19, [#allocation7]  }
   0xc   :  { %s58_s20 = sshll.u32 %s536_s0, 4  ;;  %s537_s21 = smov 128   ;;  %s59_s20 = int_to_ptr.vmem [resolvable:$true] %s58_s20 }
   0xd   :  { %s538_s22 = smov 8  }
   0xe   :  { %64 = dma.hbm_to_vmem [thread:$0]  %s57_s17, 4096, %s59_s20, [#allocation10], %s537_s21, %s537_s21, %s538_s22  }
   0xf   :  { %523 = dma.done.wait [#allocation4], 128  }
  0x10   :  { %524 = vsyncadd [#allocation4], 4294967168 }
  0x11   :  { %525 = dma.done.wait [#allocation7], 1088  }
  0x12   :  { %526 = vsyncadd [#allocation7], 4294966208 }
  0x13   :  { %527 = dma.done.wait [#allocation10], 4096  }
  0x14   :  { %528 = vsyncadd [#allocation10], 4294963200  ;;  %v94_v0 = vld [vmem:[#allocation6 + $0x30] sm:$0xff]  ;;  %v95_v1 = vld [vmem:[#allocation6 + $0x38] sm:$0xff]  ;;  %vm96_vm0 = vcmask 261120   ;;  %v539_v9 = vmov 8.0  }
  0x15   :  { %v92_v2 = vld [vmem:[#allocation6 + $0x20] sm:$0xff]  ;;  %112 = vmatpush.msra.mxu0 %v94_v0  ;;  %132 = vmatpush.msra.mxu1 %v95_v1  ;;  %v93_v3 = vld [vmem:[#allocation6 + $0x28] sm:$0xff]  ;;  %v90_v4 = vld [vmem:[#allocation6 + $0x10] sm:$0xff]  ;;  %393 = vrcp.f32 %v539_v9  ;;  %vm205_vm7 = vcmask 1040384   ;;  %s540_s29 = smov [#allocation11]   ;;  %s368_s9 = sshll.u32 %s633_s7, 4  ;;  %s369_s9 = int_to_ptr.hbm [resolvable:$true] %s368_s9 }
  0x16   :  { %v91_v5 = vld [vmem:[#allocation6 + $0x18] sm:$0xff]  ;;  %v88_v6 = vld [vmem:[#allocation6] sm:$0xff]  ;;  %v89_v7 = vld [vmem:[#allocation6 + $0x8] sm:$0xff]  ;;  %s366_s30 = sshll.u32 %s540_s29, 4  ;;  %vm359_vm12 = vcmask 57344   ;;  %s367_s30 = int_to_ptr.vmem [resolvable:$true] %s366_s30 }
  0x17   :  { %113 = vmatpush.msra.mxu0 %v92_v2  ;;  %133 = vmatpush.msra.mxu1 %v93_v3  ;;  %v87_v8 = vld [vmem:[#allocation3] sm:$0xff]  ;;  %v240_v29 = vld [vmem:[#allocation9 + $0x68] sm:$0xff]  ;;  %v239_v33 = vld [vmem:[#allocation9 + $0x60] sm:$0xff] }
  0x18   :  { %v242_v20 = vld [vmem:[#allocation9 + $0x78] sm:$0xff]  ;;  %v241_v24 = vld [vmem:[#allocation9 + $0x70] sm:$0xff]  ;;  %v256_v30 = vld [vmem:[#allocation9 + $0xe8] sm:$0xff] }
  0x19   :  { %114 = vmatpush.msra.mxu0 %v90_v4  ;;  %134 = vmatpush.msra.mxu1 %v91_v5  ;;  %v258_v21 = vld [vmem:[#allocation9 + $0xf8] sm:$0xff]  ;;  %v257_v25 = vld [vmem:[#allocation9 + $0xf0] sm:$0xff]  ;;  %v255_v34 = vld [vmem:[#allocation9 + $0xe0] sm:$0xff] }
  0x1a   :  { %259 = vmatpush.msra.mxu2 %v242_v20  ;;  %279 = vmatpush.msra.mxu3 %v258_v21  ;;  %v238_v38 = vld [vmem:[#allocation9 + $0x58] sm:$0xff]  ;;  %v237_v42 = vld [vmem:[#allocation9 + $0x50] sm:$0xff]  ;;  %v236_v46 = vld [vmem:[#allocation9 + $0x48] sm:$0xff] }
  0x1b   :  { %115 = vmatpush.msra.mxu0 %v88_v6  ;;  %135 = vmatpush.msra.mxu1 %v89_v7  ;;  %v394_v10 = vpop.eup %393  ;;  %v254_v39 = vld [vmem:[#allocation9 + $0xd8] sm:$0xff]  ;;  %v253_v43 = vld [vmem:[#allocation9 + $0xd0] sm:$0xff]  ;;  %v252_v47 = vld [vmem:[#allocation9 + $0xc8] sm:$0xff] }
  0x1c   :  { %380 = vmatmul.msk.f32.vlgmr.msra.gmra.mxu0 %vm96_vm0, %v87_v8  ;;  %381 = vmatmul.msk.f32.vlgmr.msra.gmra.mxu1 %vm96_vm0, %v87_v8  ;;  %v153_v11 = vmul.f32 8.0, %v394_v10  ;;  %vm157_vm1 = vweird.f32 %v394_v10  ;;  %v235_v50 = vld [vmem:[#allocation9 + $0x40] sm:$0xff]  ;;  %v234_v54 = vld [vmem:[#allocation9 + $0x38] sm:$0xff]  ;;  %v233_v58 = vld [vmem:[#allocation9 + $0x30] sm:$0xff] }
  0x1d   :  { %260 = vmatpush.msra.mxu2 %v241_v24  ;;  %280 = vmatpush.msra.mxu3 %v257_v25  ;;  %v251_v51 = vld [vmem:[#allocation9 + $0xc0] sm:$0xff]  ;;  %v250_v55 = vld [vmem:[#allocation9 + $0xb8] sm:$0xff]  ;;  %v249_v59 = vld [vmem:[#allocation9 + $0xb0] sm:$0xff] }
  0x1e   :  { %v154_v12 = vsub.f32 1.0, %v153_v11  ;;  %v232_v62 = vld [vmem:[#allocation9 + $0x28] sm:$0xff]  ;;  %v231_v2 = vld [vmem:[#allocation9 + $0x20] sm:$0xff]  ;;  %v230_v6 = vld [vmem:[#allocation9 + $0x18] sm:$0xff] }
  0x1f   :  { %261 = vmatpush.msra.mxu2 %v240_v29  ;;  %281 = vmatpush.msra.mxu3 %v256_v30  ;;  %v248_v63 = vld [vmem:[#allocation9 + $0xa8] sm:$0xff]  ;;  %v247_v3 = vld [vmem:[#allocation9 + $0xa0] sm:$0xff]  ;;  %v246_v7 = vld [vmem:[#allocation9 + $0x98] sm:$0xff] }
  0x20   :  { %v155_v17 = vmul.f32 %v394_v10, %v154_v12  ;;  %v245_v11 = vld [vmem:[#allocation9 + $0x90] sm:$0xff]  ;;  %v228_v12 = vld [vmem:[#allocation9 + $0x8] sm:$0xff] }
  0x21   :  { %262 = vmatpush.msra.mxu2 %v239_v33  ;;  %282 = vmatpush.msra.mxu3 %v255_v34  ;;  %v179_v33 = vld [vmem:[#allocation8] ss:$2 sm:$0x3] }
  0x22   :  { %v156_v26 = vadd.f32 %v394_v10, %v155_v17  ;;  %v243_v17 = vld [vmem:[#allocation9 + $0x80] sm:$0xff] }
  0x23   :  { %263 = vmatpush.msra.mxu2 %v238_v38  ;;  %283 = vmatpush.msra.mxu3 %v254_v39  ;;  %v217_v38 = vld [vmem:[#allocation8 + $0x1] ss:$2 sm:$0x3] }
  0x24   :  { %v593_v35 = vsel %vm157_vm1, %v394_v10, %v156_v26  ;;  %v229_v10 = vld [vmem:[#allocation9 + $0x10] sm:$0xff] }
  0x25   :  { %264 = vmatpush.msra.mxu2 %v237_v42  ;;  %284 = vmatpush.msra.mxu3 %v253_v43  ;;  %v219_v42 = vperm.slane %v217_v38, 0  ;;  %v220_v43 = vperm.slane %v217_v38, 1 }
  0x27   :  { %265 = vmatpush.msra.mxu2 %v236_v46  ;;  %285 = vmatpush.msra.mxu3 %v252_v47 }
  0x29   :  { %266 = vmatpush.msra.mxu2 %v235_v50  ;;  %286 = vmatpush.msra.mxu3 %v251_v51 }
  0x2b   :  { %267 = vmatpush.msra.mxu2 %v234_v54  ;;  %287 = vmatpush.msra.mxu3 %v250_v55 }
  0x2d   :  { %268 = vmatpush.msra.mxu2 %v233_v58  ;;  %288 = vmatpush.msra.mxu3 %v249_v59 }
  0x2f   :  { %269 = vmatpush.msra.mxu2 %v232_v62  ;;  %289 = vmatpush.msra.mxu3 %v248_v63 }
  0x31   :  { %270 = vmatpush.msra.mxu2 %v231_v2  ;;  %290 = vmatpush.msra.mxu3 %v247_v3 }
  0x33   :  { %271 = vmatpush.msra.mxu2 %v230_v6  ;;  %291 = vmatpush.msra.mxu3 %v246_v7 }
  0x35   :  { %272 = vmatpush.msra.mxu2 %v229_v10  ;;  %292 = vmatpush.msra.mxu3 %v245_v11  ;;  %v315_v11 = vld [vmem:[%s630_s4] sm:$0x1] }
  0x37   :  { %273 = vmatpush.msra.mxu2 %v228_v12 }
  0x99   :  { %v117_v13 = vpop.f32.mrf.mxu0  ;;  %v137_v14 = vpop.f32.mrf.mxu1 }
  0x9a   :  { %v140_v15 = vrot.slane %v117_v13, 4  ;;  %v146_v16 = vrot.slane %v137_v14, 4 }
  0x9c   :  { %v141_v18 = vadd.f32 %v140_v15, %v117_v13  ;;  %v147_v19 = vadd.f32 %v146_v16, %v137_v14  ;;  %v227_v16 = vld [vmem:[#allocation9] sm:$0xff] }
  0x9d   :  { %274 = vmatpush.msra.mxu2 %v227_v16 }
  0x9e   :  { %v142_v22 = vrot.slane %v141_v18, 2  ;;  %v148_v23 = vrot.slane %v147_v19, 2 }
  0xa0   :  { %v143_v27 = vadd.f32 %v142_v22, %v141_v18  ;;  %v149_v28 = vadd.f32 %v148_v23, %v147_v19 }
  0xa2   :  { %v144_v31 = vrot.slane %v143_v27, 1  ;;  %v150_v32 = vrot.slane %v149_v28, 1 }
  0xa4   :  { %v145_v36 = vadd.f32 %v144_v31, %v143_v27  ;;  %v151_v37 = vadd.f32 %v150_v32, %v149_v28 }
  0xa6   :  { %v159_v40 = vmul.f32 %v593_v35, %v145_v36  ;;  %v160_v41 = vmul.f32 %v593_v35, %v151_v37 }
  0xa8   :  { %v597_v44 = vsub.f32 %v117_v13, %v159_v40  ;;  %v599_v45 = vsub.f32 %v137_v14, %v160_v41  ;;  %v244_v13 = vld [vmem:[#allocation9 + $0x88] sm:$0xff] }
  0xa9   :  { %293 = vmatpush.msra.mxu3 %v244_v13 }
  0xaa   :  { %v163_v48 = vmul.f32 %v597_v44, %v597_v44  ;;  %v164_v49 = vmul.f32 %v599_v45, %v599_v45 }
  0xab   :  { %294 = vmatpush.msra.mxu3 %v243_v17 }
  0xac   :  { %v165_v52 = vrot.slane %v163_v48, 4  ;;  %v171_v53 = vrot.slane %v164_v49, 4 }
  0xae   :  { %v166_v56 = vadd.f32 %v165_v52, %v163_v48  ;;  %v172_v57 = vadd.f32 %v171_v53, %v164_v49 }
  0xb0   :  { %v167_v60 = vrot.slane %v166_v56, 2  ;;  %v173_v61 = vrot.slane %v172_v57, 2 }
  0xb2   :  { %v168_v0 = vadd.f32 %v167_v60, %v166_v56  ;;  %v174_v1 = vadd.f32 %v173_v61, %v172_v57 }
  0xb4   :  { %v169_v4 = vrot.slane %v168_v0, 1  ;;  %v175_v5 = vrot.slane %v174_v1, 1 }
  0xb6   :  { %v170_v8 = vadd.f32 %v169_v4, %v168_v0  ;;  %v176_v9 = vadd.f32 %v175_v5, %v174_v1 }
  0xb8   :  { %v177_v14 = vmul.f32 %v170_v8, %v593_v35  ;;  %v178_v15 = vmul.f32 %v176_v9, %v593_v35 }
  0xba   :  { %v180_v18 = vadd.f32 1e-05, %v177_v14  ;;  %v181_v19 = vadd.f32 1e-05, %v178_v15 }
  0xbc   :  { %395 = vrsqrt.f32 %v180_v18  ;;  %vm198_vm4 = vweird.f32 %v181_v19  ;;  %vm188_vm6 = vweird.f32 %v180_v18 }
  0xbd   :  { %397 = vrsqrt.f32 %v181_v19 }
  0xc2   :  { %v396_v20 = vpop.eup %395 }
  0xc3   :  { %v398_v21 = vpop.eup %397  ;;  %v183_v22 = vmul.f32 %v396_v20, %v180_v18  ;;  %vm189_vm3 = vweird.f32 %v396_v20 }
  0xc4   :  { %v193_v23 = vmul.f32 %v398_v21, %v181_v19  ;;  %vm199_vm2 = vweird.f32 %v398_v21  ;;  %vm190_vm8 = vmor %vm188_vm6, %vm189_vm3  ;;  %v334_v19 = vld [vmem:[%s631_s5] sm:$0x1] }
  0xc5   :  { %v184_v24 = vmul.f32 %v396_v20, %v183_v22  ;;  %vm200_vm5 = vmor %vm198_vm4, %vm199_vm2 }
  0xc6   :  { %v194_v25 = vmul.f32 %v398_v21, %v193_v23 }
  0xc7   :  { %v185_v26 = vmul.f32 0.5, %v184_v24 }
  0xc8   :  { %v195_v27 = vmul.f32 0.5, %v194_v25 }
  0xc9   :  { %v186_v28 = vsub.f32 1.5, %v185_v26 }
  0xca   :  { %v196_v29 = vsub.f32 1.5, %v195_v27 }
  0xcb   :  { %v187_v30 = vmul.f32 %v396_v20, %v186_v28 }
  0xcc   :  { %v197_v31 = vmul.f32 %v398_v21, %v196_v29 }
  0xcd   :  { %v191_v36 = vsel %vm190_vm8, %v396_v20, %v187_v30  ;;  %v336_v20 = vstv %s632_s6 }
  0xce   :  { %v201_v32 = vsel %vm200_vm5, %v398_v21, %v197_v31 }
  0xcf   :  { %v204_v34 = vrot.slane %v201_v32, 7 }
  0xd1   :  { %v206_v37 = vsel %vm205_vm7, %v191_v36, %v204_v34 }
  0xd2   :  { %v208_v39 = vmul.f32 %v206_v37, %v179_v33 }
  0xd4   :  { %v211_v40 = vperm.slane %v208_v39, 1  ;;  %v210_v41 = vperm.slane %v208_v39, 0 }
  0xd6   :  { %v215_v46 = vmul.f32 %v211_v40, %v599_v45  ;;  %v214_v47 = vmul.f32 %v210_v41, %v597_v44 }
  0xd8   :  { %v223_v48 = vadd.f32 %v219_v42, %v214_v47  ;;  %v224_v49 = vadd.f32 %v220_v43, %v215_v46 }
  0xda   :  { %v225_v50 = vmax.f32 %v223_v48, 0.0  ;;  %v226_v51 = vmax.f32 %v224_v49, 0.0 }
  0xdc   :  { %275 = vmatmul.f32.vlgmr.msra.gmra.mxu2 %v225_v50  ;;  %295 = vmatmul.f32.vlgmr.msra.gmra.mxu3 %v226_v51 }
 0x15f   :  { %v276_v52 = vpop.f32.mrf.mxu2  ;;  %v296_v53 = vpop.f32.mrf.mxu3 }
 0x160   :  { %v297_v54 = vadd.f32 %v296_v53, %v276_v52 }
 0x162   :  { %v299_v55 = vrot.slane %v297_v54, 4 }
 0x164   :  { %v300_v56 = vadd.f32 %v299_v55, %v297_v54 }
 0x166   :  { %v301_v57 = vrot.slane %v300_v56, 2 }
 0x168   :  { %v302_v58 = vadd.f32 %v301_v57, %v300_v56 }
 0x16a   :  { %v303_v59 = vrot.slane %v302_v58, 1 }
 0x16c   :  { %v304_v60 = vadd.f32 %v303_v59, %v302_v58 }
 0x16e   :  { %v305_v61 = vmul.f32 %v304_v60, %v593_v35 }
 0x170   :  { %v306_v45 = vsub.f32 %v297_v54, %v305_v61 }
 0x172   :  { %v307_v62 = vmul.f32 %v306_v45, %v306_v45 }
 0x174   :  { %v308_v44 = vrot.slane %v307_v62, 4 }
 0x176   :  { %v309_v63 = vadd.f32 %v308_v44, %v307_v62 }
 0x178   :  { %v310_v0 = vrot.slane %v309_v63, 2 }
 0x17a   :  { %v311_v1 = vadd.f32 %v310_v0, %v309_v63 }
 0x17c   :  { %v312_v2 = vrot.slane %v311_v1, 1 }
 0x17e   :  { %v313_v3 = vadd.f32 %v312_v2, %v311_v1 }
 0x180   :  { %v314_v4 = vmul.f32 %v313_v3, %v593_v35  ;;  %v392_v35 = vld [vmem:[%s630_s4 + $0x1] ss:$0 sm:$0xff] }
 0x182   :  { %v316_v5 = vadd.f32 1e-05, %v314_v4 }
 0x184   :  { %399 = vrsqrt.f32 %v316_v5  ;;  %vm323_vm10 = vweird.f32 %v316_v5 }
 0x18a   :  { %v400_v6 = vpop.eup %399 }
 0x18b   :  { %v318_v7 = vmul.f32 %v400_v6, %v316_v5  ;;  %vm324_vm9 = vweird.f32 %v400_v6 }
 0x18c   :  { %vm325_vm11 = vmor %vm323_vm10, %vm324_vm9 }
 0x18d   :  { %v319_v8 = vmul.f32 %v400_v6, %v318_v7 }
 0x18f   :  { %v320_v9 = vmul.f32 0.5, %v319_v8 }
 0x191   :  { %v321_v10 = vsub.f32 1.5, %v320_v9 }
 0x193   :  { %v322_v12 = vmul.f32 %v400_v6, %v321_v10 }
 0x195   :  { %v326_v13 = vsel %vm325_vm11, %v400_v6, %v322_v12 }
 0x196   :  { %v327_v14 = vmul.f32 %v326_v13, %v315_v11 }
 0x198   :  { %v328_v15 = vperm.slane %v327_v14, 0 }
 0x19a   :  { %v329_v16 = vmul.f32 %v328_v15, %v306_v45 }
 0x19c   :  { %v332_v17 = vadd.f32 %v392_v35, %v329_v16 }
 0x19e   :  { %v333_v18 = vmax.f32 %v332_v17, 0.0 }
 0x1a0   :  { %352 = vmatpush.xpose.msrb.mxu0 %v333_v18 }
 0x1a3   :  { %353 = vmatmul.f32.vlgmr.msrb.gmra.mxu0 %v334_v19 }
 0x220   :  { %v354_v21 = vpop.f32.mrf.mxu0 }
 0x221   :  { %v355_v22 = vadd.f32 %v354_v21, %v336_v20 }
 0x223   :  { %401 = vtanh.f32 %v355_v22 }
 0x229   :  { %v402_v23 = vpop.eup %401 }
 0x22a   :  { %v358_v24 = vmul.f32 2.0, %v402_v23 }
 0x22c   :  { %360 = vst.msk [vmem:[#allocation11] sm:$0x1] %vm359_vm12, %v358_v24 }
 0x22d   :  { %371 = dma.vmem_to_hbm [thread:$0]  %s367_s30, 16, %s369_s9, [#allocation5]  }
 0x22e   :  { %529 = dma.done.wait [#allocation5], 16  }
 0x22f   :  { %530 = vsyncadd [#allocation5], 4294967280 }
 0x230   :  { %376 = vsyncpa [#allocation4], 1 }
 0x231   :  { %377 = vsyncpa [#allocation7], 1 }
 0x232   :  { %378 = vsyncpa [#allocation10], 1 }
 0x233   :  { %379 = vsyncpa [#allocation5], 1 }

</bundles_post_ra>
